<compile_context>
chip_gen: v6e
topology: v6e:2x2x1
jax: 0.10.0
libtpu: 0.0.40
codegen_flags: <defaults>
</compile_context>

<pallas_src>
import functools

import jax
import jax.numpy as jnp
from jax.experimental import pallas as pl
from jax.experimental.pallas import tpu as pltpu

_LANE = 128


def _round_up(x, m):
    return ((x + m - 1) // m) * m


def _cola_kernel(w_ref, v_ref, out_ref, *, nobjects, ncombos):
    # w_ref:   (ncombos, nobjects)        resident across all grid steps
    # v_ref:   (nobjects, tn)             lane-dense column tile of folded input
    # out_ref: (nobjects + ncombos, tn)   lane-dense output tile
    v = v_ref[...]
    # Identity half of `combo`: straight copy, no matmul.
    out_ref[pl.ds(0, nobjects), :] = v
    # Learned half: small MXU matmul with f32 accumulation.
    wv = jnp.dot(w_ref[...], v, preferred_element_type=jnp.float32)
    out_ref[pl.ds(nobjects, ncombos), :] = wv.astype(out_ref.dtype)


def cola_forward(vectors, w_combo, *, block_n=2048, compute_dtype=None):
    """CoLa forward: einsum('ij,bjk->bik', [I ; w_combo], vectors).

    vectors: (B, nobjects, k);  w_combo: (ncombos, nobjects)
    returns: (B, nobjects + ncombos, k) in vectors.dtype
    """
    B, nobjects, k = vectors.shape
    ncombos, nobj2 = w_combo.shape
    assert nobj2 == nobjects
    outputobj = nobjects + ncombos
    out_dtype = vectors.dtype
    cdtype = out_dtype if compute_dtype is None else compute_dtype

    # ---- wrapper layout plumbing: fold batch onto the lane axis --------------
    # V[j, b*k + c] = vectors[b, j, c]  ->  (nobjects, B*k)
    n_cols = B * k
    v2d = jnp.transpose(vectors, (1, 0, 2)).reshape(nobjects, n_cols).astype(cdtype)

    # Column tile: a multiple of the 128-lane vreg width; pad columns so every
    # tile (and every store) is full and unmasked.  tn=2048 (f32) keeps the
    # double-buffered working set well under even v5e's 16 MiB scoped VMEM:
    # 2 * (15 + 35) * 2048 * 4 B ~= 0.8 MiB.
    tn = min(_round_up(block_n, _LANE), _round_up(n_cols, _LANE))
    n_pad = _round_up(n_cols, tn)
    if n_pad != n_cols:
        v2d = jnp.pad(v2d, ((0, 0), (0, n_pad - n_cols)))

    w = w_combo.astype(cdtype)
    grid = (n_pad // tn,)

    kernel = functools.partial(_cola_kernel, nobjects=nobjects, ncombos=ncombos)

    bytes_per = jnp.dtype(cdtype).itemsize
    cost = pl.CostEstimate(
        flops=2 * ncombos * nobjects * n_pad,
        transcendentals=0,
        bytes_accessed=bytes_per * (nobjects * n_pad        # V read
                                    + ncombos * nobjects    # w_combo read
                                    + outputobj * n_pad),   # output write
    )

    out2d = pl.pallas_call(
        kernel,
        out_shape=jax.ShapeDtypeStruct((outputobj, n_pad), cdtype),
        grid_spec=pltpu.PrefetchScalarGridSpec(
            num_scalar_prefetch=0,
            grid=grid,
            in_specs=[
                # w_combo: full tiny block, resident across the whole grid.
                pl.BlockSpec((ncombos, nobjects), lambda j: (0, 0)),
                # lane-dense column tile of the folded input.
                pl.BlockSpec((nobjects, tn), lambda j: (0, j)),
            ],
            out_specs=pl.BlockSpec((outputobj, tn), lambda j: (0, j)),
        ),
        compiler_params=pltpu.CompilerParams(
            # Independent column tiles -> shard across TCs on megacore parts.
            dimension_semantics=("parallel",),
        ),
        cost_estimate=cost,
    )(w, v2d)

    # ---- fold back to the PyTorch (B, outputobj, k) layout -------------------
    out = out2d[:, :n_cols].reshape(outputobj, B, k)
    out = jnp.transpose(out, (1, 0, 2)).astype(out_dtype)
    return out


if __name__ == "__main__":
    nobjects, ncombos, k = 15, 20, 4
    B = 2

    key = jax.random.PRNGKey(0)
    k_vec, k_w = jax.random.split(key)
    vectors = jax.random.normal(k_vec, (B, nobjects, k), dtype=jnp.float32)
    w_combo = jax.random.normal(k_w, (ncombos, nobjects), dtype=jnp.float32)

    out = cola_forward(vectors, w_combo)
    out = jax.block_until_ready(out)

    # Reference (same math as the torch module).
    combo = jnp.concatenate([jnp.eye(nobjects, dtype=jnp.float32), w_combo], axis=0)
    ref = jnp.einsum('ij,bjk->bik', combo, vectors)
    assert out.shape == (B, nobjects + ncombos, k)
    assert jnp.allclose(out, ref, atol=1e-5, rtol=1e-5)

    # Exercise the multi-tile grid path with a larger (still tiny) batch.
    B2 = 700  # 700 * 4 = 2800 columns -> 2 grid tiles at tn=2048
    v2 = jax.random.normal(k_vec, (B2, nobjects, k), dtype=jnp.float32)
    out2 = jax.block_until_ready(cola_forward(v2, w_combo))
    ref2 = jnp.einsum('ij,bjk->bik', combo, v2)
    assert jnp.allclose(out2, ref2, atol=1e-4, rtol=1e-4)

    print("KERNEL_OK")
</pallas_src>

<mosaic_0001>
module attributes {stable_mosaic.version = 11 : i64} {
  func.func @_cola_kernel(%arg0: i32, %arg1: memref<20x15xf32, #tpu.memory_space<vmem>>, %arg2: memref<15x128xf32, #tpu.memory_space<vmem>>, %arg3: memref<35x128xf32, #tpu.memory_space<vmem>>) attributes {dimension_semantics = [#tpu.dimension_semantics<parallel>], iteration_bounds = array<i64: 1>, scalar_prefetch = 0 : i64, scratch_operands = 0 : i64, tpu.core_type = #tpu.core_type<tc>, window_params = [{pipeline_mode = #tpu.pipeline_mode<synchronous>, transform_indices = @transform_0, window_bounds = array<i64: 20, 15>}, {transform_indices = @transform_1, window_bounds = array<i64: 15, 128>}, {transform_indices = @transform_2, window_bounds = array<i64: 35, 128>}]} {
    %c0 = arith.constant 0 : index
    %c0_0 = arith.constant 0 : index
    %0 = vector.load %arg2[%c0, %c0_0] : memref<15x128xf32, #tpu.memory_space<vmem>>, vector<15x128xf32>
    %c0_1 = arith.constant 0 : index
    %c0_2 = arith.constant 0 : index
    %1 = vector.load %arg3[%c0_1, %c0_2] : memref<35x128xf32, #tpu.memory_space<vmem>>, vector<15x128xf32>
    tpu.vector_store %arg3[%c0_1, %c0_2], %0 {strides = array<i32>} : memref<35x128xf32, #tpu.memory_space<vmem>>, vector<15x128xf32>,
    %c0_3 = arith.constant 0 : index
    %c0_4 = arith.constant 0 : index
    %2 = vector.load %arg1[%c0_3, %c0_4] : memref<20x15xf32, #tpu.memory_space<vmem>>, vector<20x15xf32>
    %cst = arith.constant dense<0.000000e+00> : vector<20x128xf32>
    %3 = tpu.matmul %2, %0, %cst {dimension_numbers = #tpu.dot_dimension_numbers<[1], [0], [0], [1], [0, 0, 1, 1], [], []>} : vector<20x15xf32>, vector<15x128xf32>, vector<20x128xf32> -> vector<20x128xf32>
    %c15 = arith.constant 15 : index
    %c0_5 = arith.constant 0 : index
    %4 = vector.load %arg3[%c15, %c0_5] : memref<35x128xf32, #tpu.memory_space<vmem>>, vector<20x128xf32>
    tpu.vector_store %arg3[%c15, %c0_5], %3 {strides = array<i32>} : memref<35x128xf32, #tpu.memory_space<vmem>>, vector<20x128xf32>,
    return
  }
  func.func @transform_0(%arg0: i32) -> (i32, i32) {
    %c0_i32 = arith.constant 0 : i32
    %c0_i32_0 = arith.constant 0 : i32
    %c0_i32_1 = arith.constant 0 : i32
    return %c0_i32, %c0_i32_0 : i32, i32
  }
  func.func @transform_1(%arg0: i32) -> (i32, i32) {
    %c0_i32 = arith.constant 0 : i32
    %c0_i32_0 = arith.constant 0 : i32
    return %c0_i32, %arg0 : i32, i32
  }
  func.func @transform_2(%arg0: i32) -> (i32, i32) {
    %c0_i32 = arith.constant 0 : i32
    %c0_i32_0 = arith.constant 0 : i32
    return %c0_i32, %arg0 : i32, i32
  }
}

</mosaic_0001>

<bundles_post_ra>
// kernel: tpu_custom_call.1
= control target key start
LH: loop header
LB: loop body
LE: loop exit
PB: predicated region body
PF: predicated region fallthrough
CT: control target
= control target key end

     0   :  { %vm29_vm0 = vcmask 1046528   ;;  %v185_v2 = vmov 0.0   ;;  %vm19_vm1 = vcmask 121856   ;;  %s223_s0 = inlined_call_operand.vmem [shape: f32[20,15], index: 0, kind: input, shape index: {}]   ;;  %s224_s1 = inlined_call_operand.vmem [shape: f32[15,128], index: 1, kind: input, shape index: {}]   ;;  %s225_s2 = inlined_call_operand.hbm [shape: f32[35,128], index: 2, kind: output, shape index: {}]  }
   0x1   :  { %v13_v0 = vld [vmem:[%s224_s1 + $0x8] sm:$0x7f]  ;;  %v12_v1 = vld [vmem:[%s224_s1] sm:$0xff]  ;;  %154 = vmatprep.subr.mxu1 %v185_v2  ;;  %141 = vmatprep.subr.mxu0 %v185_v2 }
   0x2   :  { %15 = vst [vmem:[#allocation2 + $0x8] sm:$0x7f] %v13_v0  ;;  %14 = vst [vmem:[#allocation2] sm:$0xff] %v12_v1  ;;  %156 = vmatpush3.msk.msra.mxu1 %vm29_vm0, %v13_v0  ;;  %142 = vmatpush3.msk.msra.mxu0 %vm29_vm0, %v13_v0  ;;  %v17_v3 = vld [vmem:[%s223_s0 + $0x8] sm:$0xff] }
   0x3   :  { %7 = vsyncpa [#allocation3], 0  ;;  %155 = vmatprep.subr.mxu1 %v185_v2  ;;  %vm186_vm2 = vmmov 0   ;;  %143 = vmatprep.subr.mxu0 %v185_v2  ;;  %v16_v4 = vld [vmem:[%s223_s0] sm:$0xff]  ;;  %v18_v5 = vld [vmem:[%s223_s0 + $0x10] sm:$0xf] }
   0x4   :  { %148 = vmatprep.mubr.msk.f32.mxu1 %vm186_vm2, %v185_v2  ;;  %157 = vmatpush3.msra.mxu1 %v12_v1  ;;  %s187_s18 = smov [#allocation2]  }
   0x5   :  { %149 = vmatmul.mubr.msk.f32.vlgmr.msra.gmra.mxu1 %vm19_vm1, %v17_v3  ;;  %144 = vmatpush3.msra.mxu0 %v12_v1  ;;  %s121_s19 = sshll.u32 %s187_s18, 4  ;;  %s122_s19 = int_to_ptr.vmem [resolvable:$true] %s121_s19 }
   0x6   :  { %145 = vmatprep.mubr.msk.f32.mxu0 %vm186_vm2, %v185_v2  ;;  %151 = vmatprep.mubr.msk.f32.mxu1 %vm186_vm2, %v185_v2  ;;  %s163_s20 = scalar_lea.vmem %s122_s19, 640  ;;  %p168_p1 = scmp.lt.s32.totalorder %s122_s19, %s122_s19 }
   0x7   :  { %146 = vmatmul.mubr.msk.f32.vlgmr.msra.gmra.mxu0 %vm19_vm1, %v16_v4  ;;  %p164_p0 = scmp.ne.s32.totalorder %s122_s19, %s163_s20  ;;  %p169_p2 = scmp.lt.s32.totalorder %s163_s20, %s163_s20 }
   0x9   :  { %152 = vmatmul.mubr.msk.f32.gmra.mxu1 %vm19_vm1, %v18_v5  ;;  %p170_p3 = por %p169_p2, %p168_p1 }
   0xb   :  { %p171_p4 = pnand %p170_p3, %p164_p0 }
  0xc5   :  { %v104_v6 = vpop.f32.mrf.mxu1 }
  0xc6   :  { %114 = vst [vmem:[#allocation2 + $0x17] sm:$0xff] %v104_v6 }
  0xc7   :  { %v99_v7 = vpop.f32.mrf.mxu0  ;;  %v150_v8 = vpop.f32.mrf.mxu1 }
  0xc8   :  { %113 = vst [vmem:[#allocation2 + $0xf] sm:$0xff] %v99_v7 }
  0xc9   :  { %v147_v9 = vpop.f32.mrf.mxu0  ;;  %v109_v10 = vpop.f32.mrf.mxu1 }
  0xca   :  { %115 = vst [vmem:[#allocation2 + $0x1f] sm:$0xf] %v109_v10 }
  0xcb   :  { %v153_v11 = vpop.f32.mrf.mxu1 }
  0xcc   :  { %174 = shalt.err (!%p171_p4)
}
  0xcd   :  { %s188_s0 = smov 128   ;;  %s189_s21 = smov 8  }
  0xce   :  { %127 = dma.vmem_to_hbm [thread:$0]  %s122_s19, 640, %s225_s2, [#allocation3], %s188_s0, %s188_s0, %s189_s21  }
  0xcf   :  { %183 = dma.done.wait [#allocation3], 640  }
  0xd0   :  { %184 = vsyncadd [#allocation3], 4294966656 }
  0xd1   :  { %131 = vsyncpa [#allocation3], 1 }

</bundles_post_ra>
